<compile_context>
chip_gen: v7x
topology: tpu7x:2x2x1
jax: 0.10.0
libtpu: 0.0.40
codegen_flags: <defaults>
</compile_context>

<pallas_src>
import jax
import jax.numpy as jnp
from jax.experimental import pallas as pl
from jax.experimental.pallas import tpu as pltpu


def qconv1d3_kernel(x_ref, w_ref, o_ref):
    """x_ref: (bt, 3, tt) VMEM tile; w_ref: (2, 3) SMEM; o_ref: (bt, 2, tt) VMEM tile.

    o[:, j, :] = -(sin(x[:,0,:] + w[j,0]) + sin(x[:,1,:] + w[j,1]) + sin(x[:,2,:] + w[j,2]))
    """
    # Load each channel slab once (static middle-dim slice -> sublane-strided
    # load; essentially free since the kernel is VALU-bound on sin()).
    x0 = x_ref[:, 0, :]
    x1 = x_ref[:, 1, :]
    x2 = x_ref[:, 2, :]
    for j in range(2):  # the two Qfilter_multichannel blocks (qconv1 / qconv2)
        o_ref[:, j, :] = -(jnp.sin(x0 + w_ref[j, 0])
                           + jnp.sin(x1 + w_ref[j, 1])
                           + jnp.sin(x2 + w_ref[j, 2]))


@jax.jit
def qconv1d_3(x, w):
    """x: (B, 3, T) f32, w: (2, 3) f32  ->  (B, 2, T) f32."""
    B, C, T = x.shape
    assert C == 3, "Qfilter_multichannel consumes exactly 3 input channels"
    x = x.astype(jnp.float32)
    w = w.astype(jnp.float32)

    # ---- tile selection (all Python ints; static under jit) ----
    # Cap b_tile * t_tile so the double-buffered (in + out) working set,
    # including the channel-dim sublane padding (3 -> 8, 2 -> 8), stays at
    # ~16 MiB per pallas_call (fits every TPU generation with headroom).
    MAX_ELEMS_PER_STEP = 128 * 1024

    if T <= 1024:
        t_tile = T                      # full last dim: always a legal block dim
    else:
        t_tile = 1024                   # multiple of 128; last block may be partial

    b_tile = max(1, min(B, MAX_ELEMS_PER_STEP // max(t_tile, 1)))

    num_b = pl.cdiv(B, b_tile)
    num_t = pl.cdiv(T, t_tile)

    # Guarantee >= 2 grid steps when the input allows it so the "parallel"
    # axes actually give both v7x TensorCores work (no effect on v5e/v6e).
    if num_b * num_t < 2:
        if B >= 2:
            b_tile = -(-B // 2)         # ceil(B / 2)
        elif t_tile >= 256:
            t_tile = max(128, ((t_tile // 2) // 128) * 128)
        num_b = pl.cdiv(B, b_tile)
        num_t = pl.cdiv(T, t_tile)

    n = B * T
    cost = pl.CostEstimate(flops=12 * n, transcendentals=6 * n,
                           bytes_accessed=20 * n)

    return pl.pallas_call(
        qconv1d3_kernel,
        out_shape=jax.ShapeDtypeStruct((B, 2, T), jnp.float32),
        grid=(num_b, num_t),
        in_specs=[
            # x: native layout, (b_tile, 3, t_tile) tile, auto double-buffered.
            pl.BlockSpec((b_tile, 3, t_tile), lambda i, j: (i, 0, j)),
            # w: tiny scalar table, resident in SMEM for every grid step.
            pl.BlockSpec(memory_space=pltpu.MemorySpace.SMEM),
        ],
        out_specs=pl.BlockSpec((b_tile, 2, t_tile), lambda i, j: (i, 0, j)),
        compiler_params=pltpu.CompilerParams(
            dimension_semantics=("parallel", "parallel"),
            vmem_limit_bytes=32 * 1024 * 1024,
        ),
        cost_estimate=cost,
    )(x, w)


def _reference(x, w):
    # Pure-JAX reference of the same closed-form circuit.
    return -jnp.sum(jnp.sin(x[:, None, :, :] + w[None, :, :, None]), axis=2)


if __name__ == "__main__":
    key = jax.random.PRNGKey(0)
    kx, kw, kx2, kx3 = jax.random.split(key, 4)

    # Small shapes consistent with the module: batch=2, 3 channels (required
    # by Qfilter_multichannel), sequence length=16.
    B, C, T = 2, 3, 16
    x = jax.random.normal(kx, (B, C, T), dtype=jnp.float32)
    # Deterministic stand-in for the 6 torch.randn((1, 1)) q_para parameters
    # (2 Qfilter_multichannel blocks x 3 Qfilters each).
    w = jax.random.normal(kw, (2, C), dtype=jnp.float32)

    out = jax.block_until_ready(qconv1d_3(x, w))
    ref = _reference(x, w)
    assert out.shape == (B, 2, T)
    assert out.dtype == jnp.float32
    assert jnp.allclose(out, ref, atol=1e-5, rtol=1e-5)

    # Larger shape: multi-tile grid over T with a partial last block.
    B2, T2 = 5, 13000
    x2 = jax.random.normal(kx2, (B2, C, T2), dtype=jnp.float32)
    out2 = jax.block_until_ready(qconv1d_3(x2, w))
    assert out2.shape == (B2, 2, T2)
    assert jnp.allclose(out2, _reference(x2, w), atol=1e-5, rtol=1e-5)

    # Shape that exercises the batch-split (>=2 grid steps) path with a
    # non-multiple-of-128 full-T block.
    B3, T3 = 4, 300
    x3 = jax.random.normal(kx3, (B3, C, T3), dtype=jnp.float32)
    out3 = jax.block_until_ready(qconv1d_3(x3, w))
    assert out3.shape == (B3, 2, T3)
    assert jnp.allclose(out3, _reference(x3, w), atol=1e-5, rtol=1e-5)

    print("KERNEL_OK")
</pallas_src>

<mosaic_0001>
module attributes {stable_mosaic.version = 11 : i64} {
  func.func @qconv1d3_kernel(%arg0: i32, %arg1: i32, %arg2: memref<1x3x16xf32, #tpu.memory_space<vmem>>, %arg3: memref<2x3xf32, #tpu.memory_space<smem>>, %arg4: memref<1x2x16xf32, #tpu.memory_space<vmem>>) attributes {dimension_semantics = [#tpu.dimension_semantics<parallel>, #tpu.dimension_semantics<parallel>], iteration_bounds = array<i64: 2, 1>, scalar_prefetch = 0 : i64, scratch_operands = 0 : i64, tpu.core_type = #tpu.core_type<tc>, window_params = [{transform_indices = @transform_0, window_bounds = array<i64: 1, 3, 16>}, {transform_indices = @transform_1, window_bounds = array<i64: 2, 3>}, {transform_indices = @transform_2, window_bounds = array<i64: 1, 2, 16>}]} {
    %c0 = arith.constant 0 : index
    %c0_0 = arith.constant 0 : index
    %c0_1 = arith.constant 0 : index
    %0 = vector.load %arg2[%c0, %c0_0, %c0_1] : memref<1x3x16xf32, #tpu.memory_space<vmem>>, vector<1x1x16xf32>
    %1 = vector.shape_cast %0 : vector<1x1x16xf32> to vector<1x16xf32>
    %c0_2 = arith.constant 0 : index
    %c1 = arith.constant 1 : index
    %c0_3 = arith.constant 0 : index
    %2 = vector.load %arg2[%c0_2, %c1, %c0_3] : memref<1x3x16xf32, #tpu.memory_space<vmem>>, vector<1x1x16xf32>
    %3 = vector.shape_cast %2 : vector<1x1x16xf32> to vector<1x16xf32>
    %c0_4 = arith.constant 0 : index
    %c2 = arith.constant 2 : index
    %c0_5 = arith.constant 0 : index
    %4 = vector.load %arg2[%c0_4, %c2, %c0_5] : memref<1x3x16xf32, #tpu.memory_space<vmem>>, vector<1x1x16xf32>
    %5 = vector.shape_cast %4 : vector<1x1x16xf32> to vector<1x16xf32>
    %c0_6 = arith.constant 0 : index
    %c0_7 = arith.constant 0 : index
    %6 = memref.load %arg3[%c0_6, %c0_7] : memref<2x3xf32, #tpu.memory_space<smem>>
    %7 = vector.broadcast %6 : f32 to vector<1x16xf32>
    %8 = arith.addf %1, %7 : vector<1x16xf32>
    %9 = math.sin %8 : vector<1x16xf32>
    %c0_8 = arith.constant 0 : index
    %c1_9 = arith.constant 1 : index
    %10 = memref.load %arg3[%c0_8, %c1_9] : memref<2x3xf32, #tpu.memory_space<smem>>
    %11 = vector.broadcast %10 : f32 to vector<1x16xf32>
    %12 = arith.addf %3, %11 : vector<1x16xf32>
    %13 = math.sin %12 : vector<1x16xf32>
    %14 = arith.addf %9, %13 : vector<1x16xf32>
    %c0_10 = arith.constant 0 : index
    %c2_11 = arith.constant 2 : index
    %15 = memref.load %arg3[%c0_10, %c2_11] : memref<2x3xf32, #tpu.memory_space<smem>>
    %16 = vector.broadcast %15 : f32 to vector<1x16xf32>
    %17 = arith.addf %5, %16 : vector<1x16xf32>
    %18 = math.sin %17 : vector<1x16xf32>
    %19 = arith.addf %14, %18 : vector<1x16xf32>
    %cst = arith.constant 0.000000e+00 : f32
    %20 = vector.broadcast %cst : f32 to vector<1x16xf32>
    %21 = arith.subf %20, %19 : vector<1x16xf32>
    %c0_12 = arith.constant 0 : index
    %c0_13 = arith.constant 0 : index
    %c0_14 = arith.constant 0 : index
    %22 = vector.load %arg4[%c0_12, %c0_13, %c0_14] : memref<1x2x16xf32, #tpu.memory_space<vmem>>, vector<1x1x16xf32>
    %23 = vector.shape_cast %22 : vector<1x1x16xf32> to vector<1x16xf32>
    %24 = vector.shape_cast %21 : vector<1x16xf32> to vector<1x1x16xf32>
    tpu.vector_store %arg4[%c0_12, %c0_13, %c0_14], %24 {strides = array<i32>} : memref<1x2x16xf32, #tpu.memory_space<vmem>>, vector<1x1x16xf32>,
    %c1_15 = arith.constant 1 : index
    %c0_16 = arith.constant 0 : index
    %25 = memref.load %arg3[%c1_15, %c0_16] : memref<2x3xf32, #tpu.memory_space<smem>>
    %26 = vector.broadcast %25 : f32 to vector<1x16xf32>
    %27 = arith.addf %1, %26 : vector<1x16xf32>
    %28 = math.sin %27 : vector<1x16xf32>
    %c1_17 = arith.constant 1 : index
    %c1_18 = arith.constant 1 : index
    %29 = memref.load %arg3[%c1_17, %c1_18] : memref<2x3xf32, #tpu.memory_space<smem>>
    %30 = vector.broadcast %29 : f32 to vector<1x16xf32>
    %31 = arith.addf %3, %30 : vector<1x16xf32>
    %32 = math.sin %31 : vector<1x16xf32>
    %33 = arith.addf %28, %32 : vector<1x16xf32>
    %c1_19 = arith.constant 1 : index
    %c2_20 = arith.constant 2 : index
    %34 = memref.load %arg3[%c1_19, %c2_20] : memref<2x3xf32, #tpu.memory_space<smem>>
    %35 = vector.broadcast %34 : f32 to vector<1x16xf32>
    %36 = arith.addf %5, %35 : vector<1x16xf32>
    %37 = math.sin %36 : vector<1x16xf32>
    %38 = arith.addf %33, %37 : vector<1x16xf32>
    %cst_21 = arith.constant 0.000000e+00 : f32
    %39 = vector.broadcast %cst_21 : f32 to vector<1x16xf32>
    %40 = arith.subf %39, %38 : vector<1x16xf32>
    %c0_22 = arith.constant 0 : index
    %c1_23 = arith.constant 1 : index
    %c0_24 = arith.constant 0 : index
    %41 = vector.load %arg4[%c0_22, %c1_23, %c0_24] : memref<1x2x16xf32, #tpu.memory_space<vmem>>, vector<1x1x16xf32>
    %42 = vector.shape_cast %41 : vector<1x1x16xf32> to vector<1x16xf32>
    %43 = vector.shape_cast %40 : vector<1x16xf32> to vector<1x1x16xf32>
    tpu.vector_store %arg4[%c0_22, %c1_23, %c0_24], %43 {strides = array<i32>} : memref<1x2x16xf32, #tpu.memory_space<vmem>>, vector<1x1x16xf32>,
    return
  }
  func.func @transform_0(%arg0: i32, %arg1: i32) -> (i32, i32, i32) {
    %c0_i32 = arith.constant 0 : i32
    %c0_i32_0 = arith.constant 0 : i32
    return %arg0, %c0_i32, %arg1 : i32, i32, i32
  }
  func.func @transform_1(%arg0: i32, %arg1: i32) -> (i32, i32) {
    %c0_i32 = arith.constant 0 : i32
    %c0_i32_0 = arith.constant 0 : i32
    %c0_i32_1 = arith.constant 0 : i32
    return %c0_i32, %c0_i32_0 : i32, i32
  }
  func.func @transform_2(%arg0: i32, %arg1: i32) -> (i32, i32, i32) {
    %c0_i32 = arith.constant 0 : i32
    %c0_i32_0 = arith.constant 0 : i32
    return %arg0, %c0_i32, %arg1 : i32, i32, i32
  }
}

</mosaic_0001>

<bundles_post_ra>
// kernel: qconv1d_3.1
= control target key start
LH: loop header
LB: loop body
LE: loop exit
PB: predicated region body
PF: predicated region fallthrough
CT: control target
= control target key end

     0   :  { %7 = vsyncpa [#allocation4], 0  ;;  %s1800_s0 = inlined_call_operand.vmem [shape: f32[2,3,16], index: 0, kind: input, shape index: {}]   ;;  %s1801_s1 = inlined_call_operand.vmem [shape: f32[2,3], index: 1, kind: input, shape index: {}]   ;;  %s1802_s2 = inlined_call_operand.hbm [shape: f32[2,2,16], index: 2, kind: output, shape index: {}]  }
   0x1   :  { %8 = vsyncpa [#allocation3], 0 }
   0x2   :  { %10 = vsyncpa [#allocation3 + $0x1], 0  ;;  %s1214_s9 = smov 0   ;;  %s1216_s10 = smov 0  }
   0x3   :  { %s1218_s11 = smov 0   ;;  %s1220_s12 = smov 0  }
   0x4   :  { %s1222_s13 = smov 0   ;;  %s1224_s14 = smov 0  }
   0x5 LB: > { %s930_s15 = sadd.s32 4294967295, %s1189_s14   ;;  %s931_s16 = sadd.s32 4294967294, %s1189_s14   ;;  %s1189_s14 = sphi %s1224_s14, %s16_s14   ;;  %s1185_s13 = sphi %s1222_s13, %s1823_s13   ;;  %s1181_s12 = sphi %s1220_s12, %s1822_s12   ;;  %s1177_s11 = sphi %s1218_s11, %s1821_s11   ;;  %s1173_s10 = sphi %s1216_s10, %s1820_s10   ;;  %s1169_s9 = sphi %s1214_s9, %s1819_s9  }
   0x6   : > { %s28_s17 = sadd.s32 1, %s1185_s13  ;;  %s86_s18 = sadd.s32 1, %s1177_s11 }
   0x7   : > { %p30_p0 = scmp.ge.s32.totalorder %s28_s17, 2  ;;  %p96_p1 = scmp.ne.s32.totalorder %s1177_s11, %s1173_s10 }
   0x8   : > { %p97_p2 = scmp.eq.s32.totalorder %s930_s15, 1  ;;  %p102_p3 = scmp.ne.s32.totalorder %s1173_s10, %s1169_s9 }
   0x9   : > { %s1825_s17 = smov (%p30_p0, %s28_s17), 0  ;;  %p103_p5 = scmp.eq.s32.totalorder %s931_s16, 1 }
   0xa   : > { %p1254_p4 = por %p97_p2, %p96_p1  ;;  %s81_s20 = ssub.s32 %s1185_s13, %s1825_s17 }
   0xb   : > { %p932_p6 = scmp.ge.s32.totalorder %s1189_s14, 1  ;;  %p84_p7 = scmp.eq.s32.totalorder %s81_s20, 0 }
   0xc   : > { %p1261_p8 = por %p103_p5, %p102_p3  ;;  %p110_p9 = scmp.lt.s32.totalorder %s1189_s14, 3 }
   0xd   : > { %s1267_s22 = scalar_select %p84_p7, %s1177_s11, %s86_s18  }
   0xe   : > { %p1269_p10 = pnand %p932_p6, %p110_p9  ;;  %p1273_p11 = scmp.eq.s32.totalorder %s930_s15, 0 }
   0xf   : > { %s123_s27 = sshll.u32 %s1801_s1, 4  ;;  %s124_s27 = int_to_ptr.vmem [resolvable:$true] %s123_s27 }
  0x10   : > { %p1002_p12 = pneg %p1269_p10  ;;  %s1092_s28 = scalar_lea.vmem %s124_s27, 32 }
  0x11   : > { %p1093_p0 = scmp.ne.s32.totalorder %s124_s27, %s1092_s28  ;;  %p1100_p5 = scmp.lt.s32.totalorder %s124_s27, %s124_s27 }
  0x12   : > { %p1003_p13 = pnand %p1273_p11, %p1002_p12  ;;  %p1101_p6 = scmp.lt.s32.totalorder %s1092_s28, %s1092_s28 }
  0x14   : > { %p1094_p1 = pneg %p1003_p13  ;;  %p1102_p7 = por %p1101_p6, %p1100_p5 }
  0x16   : > { %p1095_p2 = pnand %p1094_p1, %p1093_p0 }
  0x18   : > { %p1096_p3 = pneg %p1095_p2 }
  0x1a   : > { %p1103_p9 = pnand %p1102_p7, %p1096_p3 }
  0x1c   : > { %1106 = shalt.err (!%p1103_p9)
}
  0x1d   : > { %s1191_s29 = smov [#allocation2]   ;;  %146 = sbr.rel (%p1269_p10) target bundleno = 248 (0xf8), region = 28 }
  0x1e   : > { %1005 = dma.vmem_to_smem (!%p1003_p13), %s124_s27, 32, %s1191_s29, [#allocation4]  }
  0x24   : > { %1160 = dma.done.wait (%p1273_p11), [#allocation4], 32  }
  0x25   : > { %1162 = vsyncadd (%p1273_p11), [#allocation4], 4294967264 }
  0x26   : > { %152 = sfence }
  0x27   : > { %p171_p12 = scmp.lt.s32.totalorder %s1181_s12, 1  ;;  %s181_s30 = sld [smem:[#allocation2]]  ;;  %v1192_v31 = vmov 683565275   ;;  %v1193_v33 = vmov 2475754826  }
  0x28   : > { %s943_s4 = sld [smem:[#allocation2 + $0x1]]  ;;  %s948_s5 = sld [smem:[#allocation2 + $0x2]]  ;;  %v1194_v35 = vmov 2131351028   ;;  %v1195_v37 = vmov 2102212464  }
  0x29   : > { %s172_s3 = scalar_select %p171_p12, %s1181_s12, 1  ;;  %v1196_v39 = vmov 920167782   ;;  %v1197_v47 = vmov 1326507024  }
  0x2a   : > { %s1364_s16 = sld [smem:[#allocation2 + $0x80]]  ;;  %s1441_s18 = sld [smem:[#allocation2 + $0x81]] }
  0x2b   : > { %s938_s6 = sshll.u32 %s172_s3, 2  ;;  %s1538_s20 = sld [smem:[#allocation2 + $0x82]] }
  0x2c   : > { %s177_s15 = scalar_lea.vmem %s1800_s0, %s938_s6  ;;  %s168_s23 = sand.u32 1, %s1173_s10  }
  0x2d   : > { %v1295_v0 = vld [vmem:[%s177_s15] sm:$0x1]  ;;  %v182_v1 = vstv %s181_s30  ;;  %v1300_v3 = vld [vmem:[%s177_s15 + $0x1] sm:$0x1]  ;;  %v1302_v4 = vld [vmem:[%s177_s15 + $0x2] sm:$0x1] }
  0x2e   : > { %v1298_v2 = vadd.f32 %v182_v1, %v1295_v0  ;;  %v289_v7 = vstv %s943_s4  ;;  %v397_v8 = vstv %s948_s5  ;;  %s937_s24 = sshll.u32 %s168_s23, 1  ;;  %s969_s26 = sshll.u32 %s1181_s12, 5 }
  0x2f   : > { %v1307_v10 = vadd.f32 %v289_v7, %v1300_v3  ;;  %v1312_v12 = vadd.f32 %v397_v8, %v1302_v4  ;;  %s1648_s25 = scalar_lea.vmem [#allocation5], %s937_s24  ;;  %s1749_s30 = scalar_lea.hbm %s1802_s2, %s969_s26 }
  0x30   : > { %v184_v5 = vand.u32 2147483647, %v1298_v2  ;;  %v187_v6 = vand.u32 2139095040, %v1298_v2  ;;  %s847_s27 = sshll.u32 %s1648_s25, 4  ;;  %s833_s3 = scalar_lea.sflag [#allocation3], %s168_s23  ;;  %s1751_s27 = int_to_ptr.vmem [resolvable:$true] %s847_s27 }
  0x31   : > { %v291_v14 = vand.u32 2147483647, %v1307_v10  ;;  %v294_v15 = vand.u32 2139095040, %v1307_v10  ;;  %v402_v20 = vand.u32 2139095040, %v1312_v12  ;;  %s1107_s4 = scalar_lea.vmem %s1751_s27, 32  ;;  %s1198_s12 = smov [#allocation5]  }
  0x32   : > { %v188_v9 = vshrl.u32 %v187_v6, 23  ;;  %v191_v11 = vand.u32 8388607, %v184_v5  ;;  %p1108_p10 = scmp.ne.s32.totalorder %s1751_s27, %s1107_s4  ;;  %s1111_s5 = sshll.u32 %s1198_s12, 4  ;;  %s1112_s5 = int_to_ptr.vmem [resolvable:$false] %s1111_s5 }
  0x33   : > { %v298_v17 = vand.u32 8388607, %v291_v14  ;;  %v295_v19 = vshrl.u32 %v294_v15, 23  ;;  %v403_v24 = vshrl.u32 %v402_v20, 23  ;;  %s1113_s6 = scalar_lea.vmem %s1112_s5, 64  ;;  %p1114_p0 = scmp.lt.s32.totalorder %s1751_s27, %s1112_s5 }
  0x34   : > { %v939_v13 = vadd.s32 4294967169, %v188_v9  ;;  %v192_v18 = vor.u32 8388608, %v191_v11  ;;  %p1109_p11 = pnand %p1108_p10, %p1254_p4  ;;  %p1115_p1 = scmp.lt.s32.totalorder %s1113_s6, %s1107_s4 }
  0x35   : > { %v299_v21 = vor.u32 8388608, %v298_v17  ;;  %v944_v23 = vadd.s32 4294967169, %v295_v19  ;;  %v949_v41 = vadd.s32 4294967169, %v403_v24 }
  0x36   : > { %v194_v16 = vadd.s32 1, %v939_v13  ;;  %v1319_v27 = vshll.u32 %v192_v18, 8  ;;  %p1110_p13 = pneg %p1109_p11  ;;  %p1116_p2 = por %p1115_p1, %p1114_p0 }
  0x37   : > { %v301_v28 = vadd.s32 1, %v944_v23  ;;  %v1321_v29 = vshll.u32 %v299_v21, 8  ;;  %v409_v13 = vadd.s32 1, %v949_v41 }
  0x38   : > { %vm195_vm0 = vcmp.gt.s32.totalorder %v194_v16, 0  ;;  %p1117_p3 = pnand %p1116_p2, %p1110_p13 }
  0x39   : > { %v196_v22 = vsel %vm195_vm0, %v194_v16, 0  ;;  %vm302_vm4 = vcmp.gt.s32.totalorder %v301_v28, 0  ;;  %vm410_vm11 = vcmp.gt.s32.totalorder %v409_v13, 0 }
  0x3a   : > { %v197_v25 = vshrl.u32 %v196_v22, 5  ;;  %v198_v26 = vand.u32 31, %v196_v22  ;;  %v303_v54 = vsel %vm302_vm4, %v301_v28, 0  ;;  %vm186_vm4 = vcmp.lt.s32.totalorder %v1298_v2, 0 }
  0x3b   : > { %v304_v62 = vshrl.u32 %v303_v54, 5  ;;  %v305_v7 = vand.u32 31, %v303_v54 }
  0x3c   : > { %v199_v30 = vsub.s32 32, %v198_v26  ;;  %v201_v32 = vshll.u32 %v1192_v31, %v198_v26  ;;  %v204_v34 = vshll.u32 %v1193_v33, %v198_v26  ;;  %v207_v36 = vshll.u32 %v1194_v35, %v198_v26 }
  0x3d   : > { %v210_v38 = vshll.u32 %v1195_v37, %v198_v26  ;;  %v213_v40 = vshll.u32 %v1196_v39, %v198_v26  ;;  %vm216_vm1 = vcmp.lt.s32.totalorder %v197_v25, 1  ;;  %vm217_vm2 = vcmp.lt.s32.totalorder %v197_v25, 2 }
  0x3e   : > { %v200_v42 = vshrl.u32 %v1192_v31, %v199_v30  ;;  %v202_v43 = vshrl.u32 %v1193_v33, %v199_v30  ;;  %v205_v44 = vshrl.u32 %v1194_v35, %v199_v30  ;;  %v208_v45 = vshrl.u32 %v1195_v37, %v199_v30 }
  0x3f   : > { %v211_v46 = vshrl.u32 %v1196_v39, %v199_v30  ;;  %v214_v48 = vshrl.u32 %v1197_v47, %v199_v30  ;;  %vm219_vm3 = vcmp.lt.s32.totalorder %v197_v25, 4  ;;  %vm218_vm5 = vcmp.lt.s32.totalorder %v197_v25, 3 }
  0x40   : > { %v203_v49 = vor.u32 %v202_v43, %v201_v32  ;;  %v206_v50 = vor.u32 %v205_v44, %v204_v34  ;;  %v209_v51 = vor.u32 %v208_v45, %v207_v36  ;;  %v306_v19 = vsub.s32 32, %v305_v7 }
  0x41   : > { %v212_v52 = vor.u32 %v211_v46, %v210_v38  ;;  %v215_v53 = vor.u32 %v214_v48, %v213_v40  ;;  %v308_v20 = vshll.u32 %v1192_v31, %v305_v7  ;;  %v311_v21 = vshll.u32 %v1193_v33, %v305_v7 }
  0x42   : > { %v220_v55 = vsel %vm216_vm1, %v200_v42, %v203_v49  ;;  %v221_v56 = vsel %vm219_vm3, %v209_v51, 2102212464  ;;  %v224_v57 = vsel %vm216_vm1, %v203_v49, %v206_v50  ;;  %v228_v58 = vsel %vm216_vm1, %v206_v50, %v209_v51 }
  0x43   : > { %v222_v59 = vsel %vm218_vm5, %v206_v50, %v221_v56  ;;  %v225_v60 = vsel %vm219_vm3, %v212_v52, 920167782  ;;  %v229_v61 = vsel %vm219_vm3, %v215_v53, 1326507024  ;;  %v314_v22 = vshll.u32 %v1194_v35, %v305_v7 }
  0x44   : > { %v223_v63 = vsel %vm217_vm2, %v220_v55, %v222_v59  ;;  %v226_v1 = vsel %vm218_vm5, %v209_v51, %v225_v60  ;;  %v230_v6 = vsel %vm218_vm5, %v212_v52, %v229_v61  ;;  %v317_v23 = vshll.u32 %v1195_v37, %v305_v7 }
  0x45   : > { %v227_v8 = vsel %vm217_vm2, %v224_v57, %v226_v1  ;;  %v231_v9 = vsel %vm217_vm2, %v228_v58, %v230_v6  ;;  %v239_v11 = vmul.u32 %v1319_v27, %v223_v63  ;;  %v320_v24 = vshll.u32 %v1196_v39, %v305_v7 }
  0x46   : > { %v1342_v15 = vmul.u32.u64.low %v1319_v27, %v231_v9  ;;  %v1343_v16 = vmul.u32.u64.high %v1319_v27, %v231_v9, %v1342_v15  ;;  %v1346_v17 = vmul.u32.u64.low %v1319_v27, %v227_v8  ;;  %v1347_v18 = vmul.u32.u64.high %v1319_v27, %v227_v8, %v1346_v17 }
  0x47   : > { %vm323_vm6 = vcmp.lt.s32.totalorder %v304_v62, 1  ;;  %vm324_vm7 = vcmp.lt.s32.totalorder %v304_v62, 2  ;;  %v307_v25 = vshrl.u32 %v1192_v31, %v306_v19  ;;  %v309_v26 = vshrl.u32 %v1193_v33, %v306_v19 }
  0x48   : > { %v312_v27 = vshrl.u32 %v1194_v35, %v306_v19  ;;  %v315_v28 = vshrl.u32 %v1195_v37, %v306_v19  ;;  %vm241_vm8 = vc.u32 %v1343_v16, %v1346_v17  ;;  %v242_v30 = vadd.s32 1, %v1347_v18 }
  0x49   : > { %v318_v32 = vshrl.u32 %v1196_v39, %v306_v19  ;;  %vm325_vm9 = vcmp.lt.s32.totalorder %v304_v62, 3  ;;  %v310_v34 = vor.u32 %v309_v26, %v308_v20  ;;  %v321_v40 = vshrl.u32 %v1197_v47, %v306_v19 }
  0x4a   : > { %v313_v36 = vor.u32 %v312_v27, %v311_v21  ;;  %v316_v38 = vor.u32 %v315_v28, %v314_v22  ;;  %v243_v41 = vsel %vm241_vm8, %v242_v30, %v1347_v18  ;;  %vm326_vm10 = vcmp.lt.s32.totalorder %v304_v62, 4 }
  0x4b   : > { %v319_v42 = vor.u32 %v318_v32, %v317_v23  ;;  %v244_v43 = vadd.s32 %v243_v41, %v239_v11  ;;  %v322_v44 = vor.u32 %v321_v40, %v320_v24  ;;  %v327_v45 = vsel %vm323_vm6, %v307_v25, %v310_v34 }
  0x4c   : > { %v328_v46 = vsel %vm326_vm10, %v316_v38, 2102212464  ;;  %v331_v49 = vsel %vm323_vm6, %v310_v34, %v313_v36  ;;  %v335_v51 = vsel %vm323_vm6, %v313_v36, %v316_v38  ;;  %v399_v55 = vand.u32 2147483647, %v1312_v12 }
  0x4d   : > { %v329_v48 = vsel %vm325_vm9, %v313_v36, %v328_v46  ;;  %v332_v50 = vsel %vm326_vm10, %v319_v42, 920167782  ;;  %v245_v52 = vadd.s32 536870912, %v244_v43  ;;  %v336_v54 = vsel %vm326_vm10, %v322_v44, 1326507024 }
  0x4e   : > { %v333_v53 = vsel %vm325_vm9, %v316_v38, %v332_v50  ;;  %v330_v56 = vsel %vm324_vm7, %v327_v45, %v329_v48  ;;  %v337_v58 = vsel %vm325_vm9, %v319_v42, %v336_v54  ;;  %v411_v59 = vsel %vm410_vm11, %v409_v13, 0 }
  0x4f   : > { %v334_v57 = vsel %vm324_vm7, %v331_v49, %v333_v53  ;;  %v1377_v60 = vshrl.u32 %v245_v52, 30  ;;  %v338_v61 = vsel %vm324_vm7, %v335_v51, %v337_v58  ;;  %v413_v8 = vand.u32 31, %v411_v59 }
  0x50   : > { %v1381_v63 = vmul.u32.u64.low %v1321_v29, %v334_v57  ;;  %v1382_v1 = vmul.u32.u64.high %v1321_v29, %v334_v57, %v1381_v63  ;;  %v1386_v6 = vmul.u32.u64.low %v1321_v29, %v338_v61  ;;  %v1387_v7 = vmul.u32.u64.high %v1321_v29, %v338_v61, %v1386_v6 }
  0x51   : > { %v247_v9 = vshll.u32 %v1377_v60, 30  ;;  %v406_v11 = vand.u32 8388607, %v399_v55  ;;  %v508_v13 = vstv %s1364_s16  ;;  %v346_v15 = vmul.u32 %v1321_v29, %v330_v56 }
  0x52   : > { %v414_v62 = vsub.s32 32, %v413_v8  ;;  %v349_v19 = vadd.s32 1, %v1382_v1  ;;  %vm348_vm12 = vc.u32 %v1387_v7, %v1381_v63  ;;  %v1398_v20 = vadd.f32 %v508_v13, %v1295_v0 }
  0x53   : > { %v248_v18 = vsub.s32 %v244_v43, %v247_v9  ;;  %v407_v23 = vor.u32 8388608, %v406_v11  ;;  %v425_v24 = vshll.u32 %v1195_v37, %v413_v8  ;;  %v412_v26 = vshrl.u32 %v411_v59, 5 }
  0x54   : > { %v350_v22 = vsel %vm348_vm12, %v349_v19, %v1382_v1  ;;  %v416_v29 = vshll.u32 %v1192_v31, %v413_v8  ;;  %v426_v27 = vshrl.u32 %v1196_v39, %v414_v62  ;;  %v417_v30 = vshrl.u32 %v1193_v33, %v414_v62 }
  0x55   : > { %v250_v21 = vsub.s32 0, %v248_v18  ;;  %v351_v25 = vadd.s32 %v350_v22, %v346_v15  ;;  %v419_v32 = vshll.u32 %v1193_v33, %v413_v8  ;;  %v420_v0 = vshrl.u32 %v1194_v35, %v414_v62 }
  0x56   : > { %v422_v36 = vshll.u32 %v1194_v35, %v413_v8  ;;  %v423_v38 = vshrl.u32 %v1195_v37, %v414_v62  ;;  %v427_v41 = vor.u32 %v426_v27, %v425_v24  ;;  %v428_v42 = vshll.u32 %v1196_v39, %v413_v8 }
  0x57   : > { %v940_v28 = vmin.u32 %v250_v21, %v248_v18  ;;  %v352_v34 = vadd.s32 536870912, %v351_v25  ;;  %v1410_v43 = vshll.u32 %v407_v23, 8  ;;  %v240_v44 = vadd.s32 %v1346_v17, %v1343_v16 }
  0x58   : > { %v429_v46 = vshrl.u32 %v1197_v47, %v414_v62  ;;  %v513_v48 = vand.u32 2139095040, %v1398_v20  ;;  %v418_v50 = vor.u32 %v417_v30, %v416_v29  ;;  %v421_v51 = vor.u32 %v420_v0, %v419_v32 }
  0x59   : > { %v252_v40 = vclz %v940_v28  ;;  %v1414_v45 = vshrl.u32 %v352_v34, 30  ;;  %vm434_vm13 = vcmp.lt.s32.totalorder %v412_v26, 4  ;;  %v415_v53 = vshrl.u32 %v1192_v31, %v414_v62 }
  0x5a   : > { %v424_v54 = vor.u32 %v423_v38, %v422_v36  ;;  %vm431_vm14 = vcmp.lt.s32.totalorder %v412_v26, 1  ;;  %v430_v56 = vor.u32 %v429_v46, %v428_v42  ;;  %vm433_vm0 = vcmp.lt.s32.totalorder %v412_v26, 3 }
  0x5b   : > { %v941_v49 = vadd.s32 4294967294, %v252_v40  ;;  %v354_v52 = vshll.u32 %v1414_v45, 30  ;;  %v440_v16 = vsel %vm434_vm13, %v427_v41, 920167782  ;;  %vm432_vm1 = vcmp.lt.s32.totalorder %v412_v26, 2 }
  0x5c   : > { %v436_v58 = vsel %vm434_vm13, %v424_v54, 2102212464  ;;  %v439_v6 = vsel %vm431_vm14, %v418_v50, %v421_v51  ;;  %v435_v9 = vsel %vm431_vm14, %v415_v53, %v418_v50  ;;  %v441_v11 = vsel %vm433_vm0, %v424_v54, %v440_v16 }
  0x5d   : > { %vm942_vm15 = vcmp.lt.s32.totalorder %v941_v49, 0  ;;  %v355_v57 = vsub.s32 %v351_v25, %v354_v52  ;;  %v443_v13 = vsel %vm431_vm14, %v421_v51, %v424_v54  ;;  %v437_v19 = vsel %vm433_vm0, %v421_v51, %v436_v58 }
  0x5e   : > { %v255_v17 = vsel %vm942_vm15, 0, %v941_v49  ;;  %v444_v21 = vsel %vm434_vm13, %v430_v56, 1326507024  ;;  %v442_v23 = vsel %vm432_vm1, %v439_v6, %v441_v11  ;;  %v514_v27 = vshrl.u32 %v513_v48, 23 }
  0x5f   : > { %v256_v59 = vsub.s32 32, %v255_v17  ;;  %v257_v61 = vshll.u32 %v248_v18, %v255_v17  ;;  %v260_v1 = vsub.s32 4294967266, %v255_v17  ;;  %v357_v8 = vsub.s32 0, %v355_v57 }
  0x60   : > { %v445_v18 = vsel %vm433_vm0, %v427_v41, %v444_v21  ;;  %v438_v30 = vsel %vm432_vm1, %v435_v9, %v437_v19  ;;  %v1437_v40 = vmul.u32.u64.low %v1410_v43, %v442_v23  ;;  %v1438_v42 = vmul.u32.u64.high %v1410_v43, %v442_v23, %v1437_v40 }
  0x61   : > { %v258_v15 = vshrl.u32 %v240_v44, %v256_v59  ;;  %v261_v62 = vadd.s32 127, %v260_v1  ;;  %v945_v22 = vmin.u32 %v357_v8, %v355_v57  ;;  %v446_v29 = vsel %vm432_vm1, %v443_v13, %v445_v18 }
  0x62   : > { %v1433_v34 = vmul.u32.u64.low %v1410_v43, %v446_v29  ;;  %v1434_v36 = vmul.u32.u64.high %v1410_v43, %v446_v29, %v1433_v34  ;;  %v954_v41 = vadd.s32 4294967169, %v514_v27  ;;  %v270_v46 = vsub.s32 4, %v1377_v60 }
  0x63   : > { %v259_v24 = vor.u32 %v258_v15, %v257_v61  ;;  %v262_v25 = vshll.u32 %v261_v62, 23  ;;  %v359_v28 = vclz %v945_v22  ;;  %v347_v26 = vadd.s32 %v1381_v63, %v1387_v7 }
  0x64   : > { %v520_v48 = vadd.s32 1, %v954_v41  ;;  %v454_v51 = vmul.u32 %v1410_v43, %v438_v30  ;;  %vm456_vm3 = vc.u32 %v1434_v36, %v1437_v40  ;;  %v457_v56 = vadd.s32 1, %v1438_v42 }
  0x65   : > { %v263_v32 = vor.u32 4788187, %v262_v25  ;;  %v266_v0 = vcvt.s32.f32 %v259_v24  ;;  %v946_v38 = vadd.s32 4294967294, %v359_v28  ;;  %v510_v16 = vand.u32 2147483647, %v1398_v20 }
  0x66   : > { %vm521_vm5 = vcmp.gt.s32.totalorder %v520_v48, 0  ;;  %v458_v17 = vsel %vm456_vm3, %v457_v56, %v1438_v42  ;;  %v271_v59 = vsel %vm186_vm4, %v270_v46, %v1377_v60  ;;  %vm1458_vm6 = vcmp.le.f32.partialorder %v184_v5, 0.7853982 }
  0x67   : > { %v264_v44 = vand.u32 2147483647, %v263_v32  ;;  %vm947_vm2 = vcmp.lt.s32.totalorder %v946_v38, 0  ;;  %v522_v58 = vsel %vm521_vm5, %v520_v48, 0  ;;  %vm293_vm7 = vcmp.lt.s32.totalorder %v1307_v10, 0 }
  0x68   : > { %v362_v50 = vsel %vm947_vm2, 0, %v946_v38  ;;  %v524_v61 = vand.u32 31, %v522_v58  ;;  %v615_v13 = vstv %s1441_s18  ;;  %v273_v15 = vsel %vm1458_vm6, 0, %v271_v59 }
  0x69   : > { %v267_v49 = vmul.f32 %v266_v0, %v264_v44  ;;  %v363_v52 = vsub.s32 32, %v362_v50  ;;  %v364_v53 = vshll.u32 %v355_v57, %v362_v50  ;;  %v367_v54 = vsub.s32 4294967266, %v362_v50 }
  0x6a   : > { %v459_v57 = vadd.s32 %v458_v17, %v454_v51  ;;  %v525_v11 = vsub.s32 32, %v524_v61  ;;  %v517_v19 = vand.u32 8388607, %v510_v16  ;;  %vm1472_vm8 = vcmp.le.f32.partialorder %v291_v14, 0.7853982 }
  0x6b   : > { %v365_v63 = vshrl.u32 %v347_v26, %v363_v52  ;;  %v368_v7 = vadd.s32 127, %v367_v54  ;;  %v268_v43 = vxor.u32 2147483648, %v267_v49  ;;  %v377_v22 = vsub.s32 4, %v1414_v45 }
  0x6c   : > { %v460_v9 = vadd.s32 536870912, %v459_v57  ;;  %v527_v18 = vshll.u32 %v1192_v31, %v524_v61  ;;  %v528_v25 = vshrl.u32 %v1193_v33, %v525_v11  ;;  %v530_v29 = vshll.u32 %v1193_v33, %v524_v61 }
  0x6d   : > { %v366_v6 = vor.u32 %v365_v63, %v364_v53  ;;  %v369_v8 = vshll.u32 %v368_v7, 23  ;;  %v269_v5 = vsel %vm186_vm4, %v268_v43, %v267_v49  ;;  %v536_v27 = vshll.u32 %v1195_v37, %v524_v61 }
  0x6e   : > { %v1477_v23 = vshrl.u32 %v460_v9, 30  ;;  %v531_v14 = vshrl.u32 %v1194_v35, %v525_v11  ;;  %v533_v30 = vshll.u32 %v1194_v35, %v524_v61  ;;  %v534_v32 = vshrl.u32 %v1195_v37, %v525_v11 }
  0x6f   : > { %v370_v62 = vor.u32 4788187, %v369_v8  ;;  %v373_v60 = vcvt.s32.f32 %v366_v6  ;;  %v277_v0 = vadd.s32 3, %v273_v15  ;;  %v523_v38 = vshrl.u32 %v522_v58, 5 }
  0x70   : > { %v462_v28 = vshll.u32 %v1477_v23, 30  ;;  %v537_v42 = vshrl.u32 %v1196_v39, %v525_v11  ;;  %v272_v41 = vsel %vm1458_vm6, %v1298_v2, %v269_v5  ;;  %v1494_v44 = vsel %vm293_vm7, %v377_v22, %v1414_v45 }
  0x71   : > { %v371_v24 = vand.u32 2147483647, %v370_v62  ;;  %v518_v26 = vor.u32 8388608, %v517_v19  ;;  %v539_v50 = vshll.u32 %v1196_v39, %v524_v61  ;;  %v540_v51 = vshrl.u32 %v1197_v47, %v525_v11 }
  0x72   : > { %v1496_v46 = vsub.s32 %v459_v57, %v462_v28  ;;  %v538_v49 = vor.u32 %v537_v42, %v536_v27  ;;  %v529_v53 = vor.u32 %v528_v25, %v527_v18  ;;  %v532_v54 = vor.u32 %v531_v14, %v530_v29 }
  0x73   : > { %v374_v34 = vmul.f32 %v373_v60, %v371_v24  ;;  %v535_v56 = vor.u32 %v534_v32, %v533_v30  ;;  %1068 = vcosq.f32 %v272_v41  ;;  %v526_v63 = vshrl.u32 %v1192_v31, %v525_v11 }
  0x74   : > { %v465_v52 = vsub.s32 0, %v1496_v46  ;;  %vm542_vm9 = vcmp.lt.s32.totalorder %v523_v38, 1  ;;  %vm545_vm10 = vcmp.lt.s32.totalorder %v523_v38, 4  ;;  %1070 = vsinq.f32 %v272_v41 }
  0x75   : > { %v375_v48 = vxor.u32 2147483648, %v374_v34  ;;  %v547_v17 = vsel %vm545_vm10, %v535_v56, 2102212464  ;;  %v1506_v58 = vand.u32 3, %v277_v0  ;;  %vm401_vm11 = vcmp.lt.s32.totalorder %v1312_v12, 0 }
  0x76   : > { %v950_v7 = vmin.u32 %v465_v52, %v1496_v46  ;;  %v541_v43 = vor.u32 %v540_v51, %v539_v50  ;;  %vm544_vm12 = vcmp.lt.s32.totalorder %v523_v38, 3  ;;  %v551_v59 = vsel %vm545_vm10, %v538_v49, 920167782 }
  0x77   : > { %v376_v45 = vsel %vm293_vm7, %v375_v48, %v374_v34  ;;  %v380_v57 = vsel %vm1472_vm8, 0, %v1494_v44  ;;  %vm543_vm13 = vcmp.lt.s32.totalorder %v523_v38, 2  ;;  %v550_v1 = vsel %vm542_vm9, %v529_v53, %v532_v54 }
  0x78   : > { %v467_v61 = vclz %v950_v7  ;;  %v379_v6 = vsel %vm1472_vm8, %v1307_v10, %v376_v45  ;;  %v546_v8 = vsel %vm542_vm9, %v526_v63, %v529_v53  ;;  %v548_v9 = vsel %vm544_vm12, %v532_v54, %v547_v17 }
  0x79   : > { %v558_v11 = vshll.u32 %v518_v26, 8  ;;  %v552_v62 = vsel %vm544_vm12, %v535_v56, %v551_v59  ;;  %v554_v60 = vsel %vm542_vm9, %v532_v54, %v535_v56  ;;  %v1522_v19 = vadd.f32 %v615_v13, %v1300_v3 }
  0x7a   : > { %v951_v15 = vadd.s32 4294967294, %v467_v61  ;;  %v455_v5 = vadd.s32 %v1437_v40, %v1434_v36  ;;  %v485_v22 = vsub.s32 4, %v1477_v23  ;;  %v553_v21 = vsel %vm543_vm13, %v550_v1, %v552_v62 }
  0x7b   : > { %v555_v18 = vsel %vm545_vm10, %v541_v43, 1326507024  ;;  %1072 = vcosq.f32 %v379_v6  ;;  %v549_v24 = vsel %vm543_vm13, %v546_v8, %v548_v9  ;;  %v620_v14 = vand.u32 2139095040, %v1522_v19 }
  0x7c   : > { %vm952_vm14 = vcmp.lt.s32.totalorder %v951_v15, 0  ;;  %v556_v25 = vsel %vm544_vm12, %v538_v49, %v555_v18  ;;  %v1532_v3 = vmul.u32.u64.low %v558_v11, %v553_v21  ;;  %v1533_v13 = vmul.u32.u64.high %v558_v11, %v553_v21, %v1532_v3 }
  0x7d   : > { %v470_v29 = vsel %vm952_vm14, 0, %v951_v15  ;;  %v557_v27 = vsel %vm543_vm13, %v554_v60, %v556_v25  ;;  %v1069_v30 = vpop.eup %1068  ;;  %1074 = vsinq.f32 %v379_v6  ;;  %vm1542_vm15 = vcmp.le.f32.partialorder %v399_v55, 0.7853982 }
  0x7e   : > { %v471_v36 = vsub.s32 32, %v470_v29  ;;  %v472_v40 = vshll.u32 %v1496_v46, %v470_v29  ;;  %v475_v28 = vsub.s32 4294967266, %v470_v29  ;;  %v1071_v38 = vpop.eup %1070  ;;  %v486_v44 = vsel %vm401_vm11, %v485_v22, %v1477_v23 }
  0x7f   : > { %v1546_v0 = vmul.u32.u64.low %v558_v11, %v557_v27  ;;  %v1547_v34 = vmul.u32.u64.high %v558_v11, %v557_v27, %v1546_v0  ;;  %v621_v46 = vshrl.u32 %v620_v14, 23  ;;  %vm283_vm0 = vcmp.eq.s32.totalorder %v1506_v58, 2 }
  0x80   : > { %v473_v42 = vshrl.u32 %v455_v5, %v471_v36  ;;  %v476_v41 = vadd.s32 127, %v475_v28  ;;  %v384_v26 = vadd.s32 3, %v380_v57  ;;  %v565_v48 = vmul.u32 %v558_v11, %v549_v24 }
  0x81   : > { %v568_v55 = vadd.s32 1, %v1533_v13  ;;  %v284_v49 = vxor.u32 2147483648, %v1069_v30  ;;  %v959_v52 = vadd.s32 4294967169, %v621_v46  ;;  %v281_v53 = vxor.u32 2147483648, %v1071_v38 }
  0x82   : > { %v474_v50 = vor.u32 %v473_v42, %v472_v40  ;;  %v477_v51 = vshll.u32 %v476_v41, 23  ;;  %v488_v54 = vsel %vm1542_vm15, 0, %v486_v44  ;;  %vm567_vm1 = vc.u32 %v1547_v34, %v1532_v3 }
  0x83   : > { %v617_v23 = vand.u32 2147483647, %v1522_v19  ;;  %vm280_vm2 = vcmp.eq.s32.totalorder %v1506_v58, 0  ;;  %v569_v45 = vsel %vm567_vm1, %v568_v55, %v1533_v13  ;;  %vm279_vm3 = vcmp.lt.s32.totalorder %v1506_v58, 2 }
  0x84   : > { %v478_v56 = vor.u32 4788187, %v477_v51  ;;  %v481_v63 = vcvt.s32.f32 %v474_v50  ;;  %v1562_v7 = vand.u32 3, %v384_v26  ;;  %v570_v17 = vadd.s32 %v569_v45, %v565_v48 }
  0x85   : > { %v627_v43 = vadd.s32 1, %v959_v52  ;;  %v1073_v59 = vpop.eup %1072  ;;  %v285_v57 = vsel %vm283_vm0, %v284_v49, %v1071_v38  ;;  %v492_v1 = vadd.s32 3, %v488_v54  ;;  %v723_v6 = vstv %s1538_s20 }
  0x86   : > { %v479_v61 = vand.u32 2147483647, %v478_v56  ;;  %v282_v8 = vsel %vm280_vm2, %v1069_v30, %v281_v53  ;;  %v571_v9 = vadd.s32 536870912, %v570_v17  ;;  %v624_v11 = vand.u32 8388607, %v617_v23 }
  0x87   : > { %vm628_vm4 = vcmp.gt.s32.totalorder %v627_v43, 0  ;;  %vm276_vm5 = vweird.f32 %v1298_v2  ;;  %v1075_v60 = vpop.eup %1074  ;;  %vm387_vm6 = vcmp.eq.s32.totalorder %v1562_v7, 0  ;;  %vm390_vm7 = vcmp.eq.s32.totalorder %v1562_v7, 2 }
  0x88   : > { %v482_v15 = vmul.f32 %v481_v63, %v479_v61  ;;  %v629_v62 = vsel %vm628_vm4, %v627_v43, 0  ;;  %v1572_v5 = vshrl.u32 %v571_v9, 30  ;;  %v286_v21 = vsel %vm279_vm3, %v282_v8, %v285_v57 }
  0x89   : > { %v631_v22 = vand.u32 31, %v629_v62  ;;  %vm386_vm8 = vcmp.lt.s32.totalorder %v1562_v7, 2  ;;  %v1577_v24 = vand.u32 3, %v492_v1  ;;  %v1580_v25 = vadd.f32 %v723_v6, %v1302_v4 }
  0x8a   : > { %v483_v18 = vxor.u32 2147483648, %v482_v15  ;;  %v391_v29 = vxor.u32 2147483648, %v1073_v59  ;;  %v573_v27 = vshll.u32 %v1572_v5, 30  ;;  %v625_v13 = vor.u32 8388608, %v624_v11 }
  0x8b   : > { %v632_v36 = vsub.s32 32, %v631_v22  ;;  %v388_v40 = vxor.u32 2147483648, %v1075_v60  ;;  %v634_v58 = vshll.u32 %v1192_v31, %v631_v22  ;;  %v637_v14 = vshll.u32 %v1193_v33, %v631_v22 }
  0x8c   : > { %v484_v28 = vsel %vm401_vm11, %v483_v18, %v482_v15  ;;  %vm383_vm9 = vweird.f32 %v1307_v10  ;;  %v1591_v30 = vsub.s32 %v570_v17, %v573_v27  ;;  %v630_v0 = vshrl.u32 %v629_v62, 5 }
  0x8d   : > { %v487_v4 = vsel %vm1542_vm15, %v1312_v12, %v484_v28  ;;  %v640_v38 = vshll.u32 %v1194_v35, %v631_v22  ;;  %v635_v42 = vshrl.u32 %v1193_v33, %v632_v36  ;;  %v638_v41 = vshrl.u32 %v1194_v35, %v632_v36 }
  0x8e   : > { %1076 = vcosq.f32 %v487_v4  ;;  %v643_v44 = vshll.u32 %v1195_v37, %v631_v22  ;;  %v576_v46 = vsub.s32 0, %v1591_v30  ;;  %v641_v26 = vshrl.u32 %v1195_v37, %v632_v36 }
  0x8f   : > { %1078 = vsinq.f32 %v487_v4  ;;  %v728_v32 = vand.u32 2139095040, %v1580_v25  ;;  %vm498_vm10 = vcmp.eq.s32.totalorder %v1577_v24, 2  ;;  %v636_v48 = vor.u32 %v635_v42, %v634_v58 }
  0x90   : > { %v639_v55 = vor.u32 %v638_v41, %v637_v14  ;;  %v644_v49 = vshrl.u32 %v1196_v39, %v632_v36  ;;  %v646_v50 = vshll.u32 %v1196_v39, %v631_v22  ;;  %v287_v51 = vsel %vm276_vm5, nan, %v286_v21 }
  0x91   : > { %v392_v52 = vsel %vm390_vm7, %v391_v29, %v1075_v60  ;;  %v642_v53 = vor.u32 %v641_v26, %v640_v38  ;;  %v647_v54 = vshrl.u32 %v1197_v47, %v632_v36  ;;  %v389_v56 = vsel %vm387_vm6, %v1073_v59, %v388_v40 }
  0x92   : > { %v633_v63 = vshrl.u32 %v1192_v31, %v632_v36  ;;  %v645_v45 = vor.u32 %v644_v49, %v643_v44  ;;  %vm649_vm11 = vcmp.lt.s32.totalorder %v630_v0, 1  ;;  %v955_v17 = vmin.u32 %v576_v46, %v1591_v30 }
  0x93   : > { %vm651_vm12 = vcmp.lt.s32.totalorder %v630_v0, 3  ;;  %v665_v43 = vshll.u32 %v625_v13, 8  ;;  %v729_v57 = vshrl.u32 %v728_v32, 23  ;;  %v648_v2 = vor.u32 %v647_v54, %v646_v50 }
  0x94   : > { %vm650_vm13 = vcmp.lt.s32.totalorder %v630_v0, 2  ;;  %vm652_vm14 = vcmp.lt.s32.totalorder %v630_v0, 4  ;;  %v657_v61 = vsel %vm649_vm11, %v636_v48, %v639_v55  ;;  %v393_v1 = vsel %vm386_vm8, %v389_v56, %v392_v52 }
  0x95   : > { %v654_v6 = vsel %vm652_vm14, %v642_v53, 2102212464  ;;  %v658_v8 = vsel %vm652_vm14, %v645_v45, 920167782  ;;  %v661_v9 = vsel %vm649_vm11, %v639_v55, %v642_v53  ;;  %v653_v59 = vsel %vm649_vm11, %v633_v63, %v636_v48 }
  0x96   : > { %v655_v11 = vsel %vm651_vm12, %v639_v55, %v654_v6  ;;  %v659_v15 = vsel %vm651_vm12, %v642_v53, %v658_v8  ;;  %v662_v62 = vsel %vm652_vm14, %v648_v2, 1326507024  ;;  %v578_v60 = vclz %v955_v17 }
  0x97   : > { %v660_v22 = vsel %vm650_vm13, %v657_v61, %v659_v15  ;;  %v663_v21 = vsel %vm651_vm12, %v645_v45, %v662_v62  ;;  %v964_v18 = vadd.s32 4294967169, %v729_v57  ;;  %v394_v7 = vsel %vm383_vm9, nan, %v393_v1 }
  0x98   : > { %v1077_v29 = vpop.eup %1076  ;;  %v664_v27 = vsel %vm650_vm13, %v661_v9, %v663_v21  ;;  %v1621_v13 = vmul.u32.u64.low %v665_v43, %v660_v22  ;;  %v1622_v36 = vmul.u32.u64.high %v665_v43, %v660_v22, %v1621_v13  ;;  %vm491_vm15 = vweird.f32 %v1312_v12 }
  0x99   : > { %v1079_v40 = vpop.eup %1078  ;;  %vm495_vm0 = vcmp.eq.s32.totalorder %v1577_v24, 0  ;;  %v499_v28 = vxor.u32 2147483648, %v1077_v29  ;;  %v656_v58 = vsel %vm650_vm13, %v653_v59, %v655_v11  ;;  %vm494_vm1 = vcmp.lt.s32.totalorder %v1577_v24, 2 }
  0x9a   : > { %v496_v10 = vxor.u32 2147483648, %v1079_v40  ;;  %v1630_v14 = vmul.u32.u64.low %v665_v43, %v664_v27  ;;  %v1631_v4 = vmul.u32.u64.high %v665_v43, %v664_v27, %v1630_v14  ;;  %v395_v38 = vadd.f32 %v394_v7, %v287_v51 }
  0x9b   : > { %v500_v42 = vsel %vm498_vm10, %v499_v28, %v1079_v40  ;;  %v956_v41 = vadd.s32 4294967294, %v578_v60  ;;  %v735_v44 = vadd.s32 1, %v964_v18  ;;  %v672_v26 = vmul.u32 %v665_v43, %v656_v58 }
  0x9c   : > { %v497_v46 = vsel %vm495_vm0, %v1077_v29, %v496_v10  ;;  %v675_v32 = vadd.s32 1, %v1622_v36  ;;  %vm674_vm3 = vc.u32 %v1631_v4, %v1621_v13  ;;  %v725_v55 = vand.u32 2147483647, %v1580_v25 }
  0x9d   : > { %v501_v0 = vsel %vm494_vm1, %v497_v46, %v500_v42  ;;  %vm736_vm2 = vcmp.gt.s32.totalorder %v735_v44, 0  ;;  %vm957_vm4 = vcmp.lt.s32.totalorder %v956_v41, 0  ;;  %vm505_vm5 = vcmask 122880  }
  0x9e   : > { %v502_v48 = vsel %vm491_vm15, nan, %v501_v0  ;;  %v737_v24 = vsel %vm736_vm2, %v735_v44, 0  ;;  %v676_v50 = vsel %vm674_vm3, %v675_v32, %v1622_v36  ;;  %v1644_v54 = vsel %vm957_vm4, 0, %v956_v41 }
  0x9f   : > { %v503_v49 = vadd.f32 %v502_v48, %v395_v38  ;;  %v677_v51 = vadd.s32 %v676_v50, %v672_v26  ;;  %v739_v52 = vand.u32 31, %v737_v24  ;;  %v732_v12 = vand.u32 8388607, %v725_v55 }
  0xa0   : > { %v738_v45 = vshrl.u32 %v737_v24, 5  ;;  %v586_v60 = vsub.s32 4294967266, %v1644_v54  ;;  %v583_v32 = vshll.u32 %v1591_v30, %v1644_v54  ;;  %vm512_vm12 = vcmp.lt.s32.totalorder %v1398_v20, 0 }
  0xa1   : > { %v504_v53 = vsub.f32 0.0, %v503_v49  ;;  %v678_v56 = vadd.s32 536870912, %v677_v51  ;;  %v740_v63 = vsub.s32 32, %v739_v52  ;;  %v742_v17 = vshll.u32 %v1192_v31, %v739_v52 }
  0xa2   : > { %v745_v43 = vshll.u32 %v1193_v33, %v739_v52  ;;  %v751_v57 = vshll.u32 %v1195_v37, %v739_v52  ;;  %v748_v6 = vshll.u32 %v1194_v35, %v739_v52  ;;  %v754_v59 = vshll.u32 %v1196_v39, %v739_v52 }
  0xa3   : > { %506 = vst.msk [vmem:[%s1648_s25] sm:$0x1] %vm505_vm5, %v504_v53  ;;  %v1655_v2 = vshrl.u32 %v678_v56, 30  ;;  %v743_v61 = vshrl.u32 %v1193_v33, %v740_v63  ;;  %v746_v1 = vshrl.u32 %v1194_v35, %v740_v63  ;;  %v749_v8 = vshrl.u32 %v1195_v37, %v740_v63 }
  0xa4   : > { %v752_v9 = vshrl.u32 %v1196_v39, %v740_v63  ;;  %v755_v11 = vshrl.u32 %v1197_v47, %v740_v63  ;;  %v733_v62 = vor.u32 8388608, %v732_v12  ;;  %v741_v29 = vshrl.u32 %v1192_v31, %v740_v63 }
  0xa5   : > { %v680_v15 = vshll.u32 %v1655_v2, 30  ;;  %v744_v22 = vor.u32 %v743_v61, %v742_v17  ;;  %v747_v21 = vor.u32 %v746_v1, %v745_v43  ;;  %v750_v35 = vor.u32 %v749_v8, %v748_v6 }
  0xa6   : > { %v753_v33 = vor.u32 %v752_v9, %v751_v57  ;;  %vm757_vm6 = vcmp.lt.s32.totalorder %v738_v45, 1  ;;  %v566_v37 = vadd.s32 %v1532_v3, %v1547_v34  ;;  %v756_v7 = vor.u32 %v755_v11, %v754_v59 }
  0xa7   : > { %v681_v18 = vsub.s32 %v677_v51, %v680_v15  ;;  %vm759_vm7 = vcmp.lt.s32.totalorder %v738_v45, 3  ;;  %v582_v39 = vsub.s32 32, %v1644_v54  ;;  %vm758_vm8 = vcmp.lt.s32.totalorder %v738_v45, 2 }
  0xa8   : > { %vm760_vm9 = vcmp.lt.s32.totalorder %v738_v45, 4  ;;  %v765_v36 = vsel %vm757_vm6, %v744_v22, %v747_v21  ;;  %v773_v28 = vshll.u32 %v733_v62, 8  ;;  %v587_v58 = vadd.s32 127, %v586_v60 }
  0xa9   : > { %v683_v47 = vsub.s32 0, %v681_v18  ;;  %v762_v27 = vsel %vm760_vm9, %v750_v35, 2102212464  ;;  %v766_v40 = vsel %vm760_vm9, %v753_v33, 920167782  ;;  %v761_v31 = vsel %vm757_vm6, %v741_v29, %v744_v22 }
  0xaa   : > { %v767_v14 = vsel %vm759_vm7, %v750_v35, %v766_v40  ;;  %v763_v3 = vsel %vm759_vm7, %v747_v21, %v762_v27  ;;  %v769_v38 = vsel %vm757_vm6, %v747_v21, %v750_v35  ;;  %v770_v42 = vsel %vm760_vm9, %v756_v7, 1326507024 }
  0xab   : > { %v960_v10 = vmin.u32 %v683_v47, %v681_v18  ;;  %v768_v34 = vsel %vm758_vm8, %v765_v36, %v767_v14  ;;  %v771_v44 = vsel %vm759_vm7, %v753_v33, %v770_v42  ;;  %v764_v48 = vsel %vm758_vm8, %v761_v31, %v763_v3 }
  0xac   : > { %v1677_v46 = vmul.u32.u64.low %v773_v28, %v768_v34  ;;  %v1678_v26 = vmul.u32.u64.high %v773_v28, %v768_v34, %v1677_v46  ;;  %v772_v24 = vsel %vm758_vm8, %v769_v38, %v771_v44  ;;  %v584_v49 = vshrl.u32 %v566_v37, %v582_v39 }
  0xad   : > { %v685_v41 = vclz %v960_v10  ;;  %v588_v50 = vshll.u32 %v587_v58, 23  ;;  %v1684_v51 = vmul.u32.u64.low %v773_v28, %v772_v24  ;;  %v1685_v52 = vmul.u32.u64.high %v773_v28, %v772_v24, %v1684_v51 }
  0xae   : > { %v673_v53 = vadd.s32 %v1621_v13, %v1631_v4  ;;  %v780_v12 = vmul.u32 %v773_v28, %v764_v48  ;;  %v783_v63 = vadd.s32 1, %v1678_v26  ;;  %v585_v43 = vor.u32 %v584_v49, %v583_v32 }
  0xaf   : > { %v961_v0 = vadd.s32 4294967294, %v685_v41  ;;  %v589_v57 = vor.u32 4788187, %v588_v50  ;;  %vm782_vm11 = vc.u32 %v1685_v52, %v1677_v46  ;;  %vm619_vm13 = vcmp.lt.s32.totalorder %v1522_v19, 0 }
  0xb0   : > { %v784_v1 = vsel %vm782_vm11, %v783_v63, %v1678_v26  ;;  %v592_v4 = vcvt.s32.f32 %v585_v43  ;;  %vm1696_vm14 = vcmp.le.f32.partialorder %v510_v16, 0.7853982  ;;  %vm1704_vm15 = vcmp.le.f32.partialorder %v617_v23, 0.7853982 }
  0xb1   : > { %vm962_vm10 = vcmp.lt.s32.totalorder %v961_v0, 0  ;;  %v785_v6 = vadd.s32 %v784_v1, %v780_v12  ;;  %v590_v13 = vand.u32 2147483647, %v589_v57  ;;  %v596_v58 = vsub.s32 4, %v1572_v5 }
  0xb2   : > { %v688_v56 = vsel %vm962_vm10, 0, %v961_v0  ;;  %v781_v10 = vadd.s32 %v1677_v46, %v1685_v52  ;;  %v703_v31 = vsub.s32 4, %v1655_v2  ;;  %vm727_vm1 = vcmp.lt.s32.totalorder %v1580_v25, 0 }
  0xb3   : > { %v689_v17 = vsub.s32 32, %v688_v56  ;;  %v690_v30 = vshll.u32 %v681_v18, %v688_v56  ;;  %v693_v54 = vsub.s32 4294967266, %v688_v56  ;;  %v786_v59 = vadd.s32 536870912, %v785_v6 }
  0xb4   : > { %v593_v22 = vmul.f32 %v592_v4, %v590_v13  ;;  %v597_v42 = vsel %vm512_vm12, %v596_v58, %v1572_v5  ;;  %v704_v46 = vsel %vm619_vm13, %v703_v31, %v1655_v2  ;;  %vm1732_vm2 = vcmp.le.f32.partialorder %v725_v55, 0.7853982 }
  0xb5   : > { %v691_v45 = vshrl.u32 %v673_v53, %v689_v17  ;;  %v694_v61 = vadd.s32 127, %v693_v54  ;;  %v787_v62 = vshrl.u32 %v786_v59, 30  ;;  %v599_v26 = vsel %vm1696_vm14, 0, %v597_v42 }
  0xb6   : > { %v594_v29 = vxor.u32 2147483648, %v593_v22  ;;  %v706_v48 = vsel %vm1704_vm15, 0, %v704_v46  ;;  %v603_v5 = vadd.s32 3, %v599_v26  ;;  %vm602_vm10 = vweird.f32 %v1398_v20 }
  0xb7   : > { %v692_v8 = vor.u32 %v691_v45, %v690_v30  ;;  %v695_v9 = vshll.u32 %v694_v61, 23  ;;  %v788_v21 = vshll.u32 %v787_v62, 30  ;;  %v811_v51 = vsub.s32 4, %v787_v62 }
  0xb8   : > { %v595_v47 = vsel %vm512_vm12, %v594_v29, %v593_v22  ;;  %v710_v52 = vadd.s32 3, %v706_v48  ;;  %v604_v63 = vand.u32 3, %v603_v5  ;;  %vm709_vm11 = vweird.f32 %v1522_v19 }
  0xb9   : > { %v696_v11 = vor.u32 4788187, %v695_v9  ;;  %v699_v15 = vcvt.s32.f32 %v692_v8  ;;  %v789_v18 = vsub.s32 %v785_v6, %v788_v21  ;;  %v598_v16 = vsel %vm1696_vm14, %v1398_v20, %v595_v47 }
  0xba   : > { %1080 = vcosq.f32 %v598_v16  ;;  %v812_v54 = vsel %vm727_vm1, %v811_v51, %v787_v62  ;;  %v711_v57 = vand.u32 3, %v710_v52  ;;  %vm606_vm3 = vcmp.eq.s32.totalorder %v604_v63, 0 }
  0xbb   : > { %v697_v60 = vand.u32 2147483647, %v696_v11  ;;  %v791_v35 = vsub.s32 0, %v789_v18  ;;  %1082 = vsinq.f32 %v598_v16  ;;  %v814_v6 = vsel %vm1732_vm2, 0, %v812_v54 }
  0xbc   : > { %vm609_vm4 = vcmp.eq.s32.totalorder %v604_v63, 2  ;;  %vm713_vm6 = vcmp.eq.s32.totalorder %v711_v57, 0  ;;  %vm716_vm7 = vcmp.eq.s32.totalorder %v711_v57, 2  ;;  %v818_v13 = vadd.s32 3, %v814_v6 }
  0xbd   : > { %v700_v33 = vmul.f32 %v699_v15, %v697_v60  ;;  %v965_v7 = vmin.u32 %v791_v35, %v789_v18  ;;  %vm605_vm8 = vcmp.lt.s32.totalorder %v604_v63, 2  ;;  %vm712_vm9 = vcmp.lt.s32.totalorder %v711_v57, 2 }
  0xbe   : > { %v819_v62 = vand.u32 3, %v818_v13 }
  0xbf   : > { %v701_v37 = vxor.u32 2147483648, %v700_v33  ;;  %v793_v27 = vclz %v965_v7 }
  0xc0   : > { %vm824_vm12 = vcmp.eq.s32.totalorder %v819_v62, 2  ;;  %vm820_vm14 = vcmp.lt.s32.totalorder %v819_v62, 2 }
  0xc1   : > { %v702_v40 = vsel %vm619_vm13, %v701_v37, %v700_v33  ;;  %v966_v28 = vadd.s32 4294967294, %v793_v27  ;;  %vm821_vm13 = vcmp.eq.s32.totalorder %v819_v62, 0 }
  0xc2   : > { %v705_v23 = vsel %vm1704_vm15, %v1522_v19, %v702_v40  ;;  %vm817_vm15 = vweird.f32 %v1580_v25 }
  0xc3   : > { %vm967_vm0 = vcmp.lt.s32.totalorder %v966_v28, 0  ;;  %1084 = vcosq.f32 %v705_v23 }
  0xc4   : > { %v796_v14 = vsel %vm967_vm0, 0, %v966_v28  ;;  %1086 = vsinq.f32 %v705_v23  ;;  %v1081_v53 = vpop.eup %1080 }
  0xc5   : > { %v797_v3 = vsub.s32 32, %v796_v14  ;;  %v798_v34 = vshll.u32 %v789_v18, %v796_v14  ;;  %v801_v38 = vsub.s32 4294967266, %v796_v14  ;;  %v1083_v12 = vpop.eup %1082  ;;  %v610_v61 = vxor.u32 2147483648, %v1081_v53 }
  0xc6   : > { %v607_v8 = vxor.u32 2147483648, %v1083_v12 }
  0xc7   : > { %v799_v41 = vshrl.u32 %v781_v10, %v797_v3  ;;  %v802_v44 = vadd.s32 127, %v801_v38  ;;  %v611_v59 = vsel %vm609_vm4, %v610_v61, %v1083_v12 }
  0xc8   : > { %v608_v4 = vsel %vm606_vm3, %v1081_v53, %v607_v8 }
  0xc9   : > { %v800_v32 = vor.u32 %v799_v41, %v798_v34  ;;  %v803_v0 = vshll.u32 %v802_v44, 23  ;;  %v612_v60 = vsel %vm605_vm8, %v608_v4, %v611_v59 }
  0xca   : > { %v613_v33 = vsel %vm602_vm10, nan, %v612_v60 }
  0xcb   : > { %v804_v24 = vor.u32 4788187, %v803_v0  ;;  %v807_v49 = vcvt.s32.f32 %v800_v32 }
  0xcd   : > { %v805_v50 = vand.u32 2147483647, %v804_v24  ;;  %v1085_v2 = vpop.eup %1084 }
  0xce   : > { %v1087_v43 = vpop.eup %1086  ;;  %v717_v55 = vxor.u32 2147483648, %v1085_v2 }
  0xcf   : > { %v808_v56 = vmul.f32 %v807_v49, %v805_v50  ;;  %v714_v9 = vxor.u32 2147483648, %v1087_v43 }
  0xd0   : > { %v718_v15 = vsel %vm716_vm7, %v717_v55, %v1087_v43 }
  0xd1   : > { %v809_v30 = vxor.u32 2147483648, %v808_v56  ;;  %v715_v11 = vsel %vm713_vm6, %v1085_v2, %v714_v9 }
  0xd2   : > { %v719_v22 = vsel %vm712_vm9, %v715_v11, %v718_v15 }
  0xd3   : > { %v810_v45 = vsel %vm727_vm1, %v809_v30, %v808_v56  ;;  %v720_v18 = vsel %vm709_vm11, nan, %v719_v22 }
  0xd4   : > { %v813_v1 = vsel %vm1732_vm2, %v1580_v25, %v810_v45  ;;  %v721_v7 = vadd.f32 %v720_v18, %v613_v33 }
  0xd5   : > { %1088 = vcosq.f32 %v813_v1 }
  0xd6   : > { %1090 = vsinq.f32 %v813_v1 }
  0xdf   : > { %v1089_v21 = vpop.eup %1088 }
  0xe0   : > { %v1091_v29 = vpop.eup %1090  ;;  %v825_v35 = vxor.u32 2147483648, %v1089_v21 }
  0xe1   : > { %v822_v37 = vxor.u32 2147483648, %v1091_v29 }
  0xe2   : > { %v826_v20 = vsel %vm824_vm12, %v825_v35, %v1091_v29 }
  0xe3   : > { %v823_v19 = vsel %vm821_vm13, %v1089_v21, %v822_v37 }
  0xe4   : > { %v827_v39 = vsel %vm820_vm14, %v823_v19, %v826_v20 }
  0xe5   : > { %v828_v47 = vsel %vm817_vm15, nan, %v827_v39 }
  0xe6   : > { %v829_v27 = vadd.f32 %v828_v47, %v721_v7 }
  0xe8   : > { %v830_v36 = vsub.f32 0.0, %v829_v27 }
  0xea   : > { %831 = vst.msk [vmem:[%s1648_s25 + $0x1] sm:$0x1] %vm505_vm5, %v830_v36 }
  0xeb   : > { %1120 = shalt.err (!%p1117_p3)
}
  0xec   : > { %s1121_s7 = scalar_lea.hbm %s1749_s30, 32  ;;  %s1125_s16 = scalar_lea.hbm %s1802_s2, 64 }
  0xed   : > { %p1122_p5 = scmp.ne.s32.totalorder %s1749_s30, %s1121_s7  ;;  %p1126_p9 = scmp.lt.u32.totalorder %s1749_s30, %s1802_s2 }
  0xee   : > { %p1127_p12 = scmp.lt.u32.totalorder %s1125_s16, %s1121_s7  ;;  %p1129_p11 = scmp.lt.u32.totalorder %s1121_s7, %s1749_s30 }
  0xef   : > { %p1123_p6 = pnand %p1122_p5, %p1254_p4 }
  0xf0   : > { %p1128_p10 = por %p1127_p12, %p1126_p9 }
  0xf1   : > { %p1124_p7 = pneg %p1123_p6 }
  0xf2   : > { %p1130_p13 = por %p1129_p11, %p1128_p10 }
  0xf4   : > { %p1131_p0 = pnand %p1130_p13, %p1124_p7 }
  0xf6   : > { %1134 = shalt.err (!%p1131_p0)
}
  0xf7   : > { %1000 = dma.vmem_to_hbm [thread:$0]  (%p1254_p4), %s1751_s27, 32, %s1749_s30, %s833_s3  }
  0xf8 PF: > { %p1012_p1 = scmp.ge.s32.totalorder %s1189_s14, 2  ;;  %s859_s23 = sand.u32 1, %s1169_s9  }
  0xf9   : > { %s860_s24 = scalar_lea.sflag [#allocation3], %s859_s23 }
  0xfa   : > { %p1007_p2 = pnand %p1012_p1, %p1261_p8 }
  0xfc   : > { %1164 = dma.done.wait (!%p1007_p2), %s860_s24, 32  }
  0xfd   : > { %1166 = vsyncadd (!%p1007_p2), %s860_s24, 4294967264  ;;  %s16_s14 = sadd.s32 1, %s1189_s14   ;;  %s1819_s9 = smov %s1173_s10 }
  0xfe   : > { %p13_p3 = scmp.ge.s32.totalorder %s16_s14, 4   ;;  %s1820_s10 = smov %s1177_s11 }
  0xff   : > { %s1821_s11 = smov %s1267_s22  ;;  %s1822_s12 = smov %s1185_s13 }
 0x100   : > { %s1823_s13 = smov %s1825_s17  ;;  %15 = sbr.rel (!%p13_p3) target bundleno = 5 (0x5), region = 68 }
 0x107   :  { %865 = vsyncpa [#allocation3], 1 }
 0x108   :  { %867 = vsyncpa [#allocation3 + $0x1], 1 }
 0x109   :  { %868 = vsyncpa [#allocation4], 1 }
 0x10a   :  { %870 = vsyncpa [#allocation4 + $0x1], 1 }

</bundles_post_ra>
